<compile_context>
chip_gen: v7x
topology: tpu7x:2x2x1
jax: 0.10.0
libtpu: 0.0.40
codegen_flags: <defaults>
</compile_context>

<pallas_src>
import functools

import jax
import jax.numpy as jnp
from jax import lax
from jax.experimental import pallas as pl
from jax.experimental.pallas import tpu as pltpu


def _inverted_residual_kernel(x_ref, mask_ref, w1_ref, b1_ref, wdw_ref, b2_ref,
                              w3_ref, b3_ref, o_ref, *, B, C, H, W):
    HW = H * W

    def per_image(b, carry):
        x1 = x_ref[b, :C, :]          # (C, HW) pass-through half (first half of channels)
        x2 = x_ref[b, C:, :]          # (C, HW) branch2 input (second half of channels)

        # --- 1x1 conv (BN1 scale folded into w1) + bias + ReLU -> MXU --------
        y = jnp.dot(w1_ref[...], x2, preferred_element_type=jnp.float32)   # (C, HW)
        y = jnp.maximum(y + b1_ref[...], 0.0)

        # --- 3x3 depthwise conv, pad=1, stride=1 (BN2 scale folded into taps) -
        # Shifted taps via XLU lane rotation; precomputed boundary masks kill both the
        # out-of-image taps and the roll wrap-around.
        acc = y * wdw_ref[:, 4:5]                              # center tap
        for k in range(9):
            if k == 4:
                continue
            dh, dw = k // 3 - 1, k % 3 - 1
            delta = dh * W + dw
            # tap[:, p] = y[:, p + delta]  (wrap-around removed by the mask)
            tap = pltpu.roll(y, (-delta) % HW, 1)
            acc = acc + (tap * wdw_ref[:, k:k + 1]) * mask_ref[k:k + 1, :]
        z = acc + b2_ref[...]                                  # BN2 bias, no ReLU

        # --- 1x1 conv (BN3 folded) + bias + ReLU -> MXU -----------------------
        o = jnp.dot(w3_ref[...], z, preferred_element_type=jnp.float32)
        o = jnp.maximum(o + b3_ref[...], 0.0)

        # --- fused concat + channel_shuffle(groups=2), dense lane stores ------
        # Output channel layout per image: (C, 2*HW); wrapper reshape to (2C, H, W)
        # interleaves x1 / branch2 exactly like channel_shuffle(., 2).
        o_ref[b, :, 0:HW] = x1
        o_ref[b, :, HW:2 * HW] = o
        return carry

    lax.fori_loop(0, B, per_image, 0)


def _tap_masks(H, W):
    """(9, H*W) float32 validity masks for the 9 depthwise taps (pad=1)."""
    pos = jnp.arange(H * W, dtype=jnp.int32)
    hh = pos // W
    ww = pos % W
    rows = []
    for k in range(9):
        dh, dw = k // 3 - 1, k % 3 - 1
        m = (hh + dh >= 0) & (hh + dh < H) & (ww + dw >= 0) & (ww + dw < W)
        rows.append(m.astype(jnp.float32))
    return jnp.stack(rows, axis=0)


def _pick_images_per_step(N, per_image_bytes, target_bytes=1 << 20):
    """Largest B that (a) gives ~target_bytes input per step, (b) keeps >=2 grid steps
    when N >= 2 (both v7x TensorCores busy), (c) divides N."""
    b = max(1, min(N, target_bytes // per_image_bytes))
    if N >= 2:
        b = min(b, N // 2)
    b = max(1, b)
    while N % b:
        b -= 1
    return b


def inverted_residual_forward(x_nchw, folded):
    """benchmodel==1, stride==1 forward. x_nchw: (N, 2C, H, W) float32 (NCHW, like PyTorch)."""
    N, C2, H, W = x_nchw.shape
    assert C2 % 2 == 0
    C = C2 // 2
    HW = H * W
    assert C % 8 == 0 and HW % 128 == 0, "kernel requires C % 8 == 0 and H*W % 128 == 0"

    B = _pick_images_per_step(N, per_image_bytes=C2 * HW * 4)
    masks = _tap_masks(H, W)
    kernel = functools.partial(_inverted_residual_kernel, B=B, C=C, H=H, W=W)

    out = pl.pallas_call(
        kernel,
        out_shape=jax.ShapeDtypeStruct((N, C, 2 * HW), jnp.float32),
        grid=(N // B,),
        in_specs=[
            pl.BlockSpec((B, C2, HW), lambda n: (n, 0, 0)),   # x, B images per grid step
            pl.BlockSpec((9, HW), lambda n: (0, 0)),          # precomputed boundary masks
            pl.BlockSpec((C, C), lambda n: (0, 0)),           # w1 (BN1 folded)
            pl.BlockSpec((C, 1), lambda n: (0, 0)),           # b1
            pl.BlockSpec((C, 9), lambda n: (0, 0)),           # depthwise taps (BN2 folded)
            pl.BlockSpec((C, 1), lambda n: (0, 0)),           # b2
            pl.BlockSpec((C, C), lambda n: (0, 0)),           # w3 (BN3 folded)
            pl.BlockSpec((C, 1), lambda n: (0, 0)),           # b3
        ],
        out_specs=pl.BlockSpec((B, C, 2 * HW), lambda n: (n, 0, 0)),
        compiler_params=pltpu.CompilerParams(
            dimension_semantics=("parallel",),
            vmem_limit_bytes=32 * 1024 * 1024,
        ),
    )(x_nchw.reshape(N, C2, HW), masks,
      folded["w1"], folded["b1"], folded["wdw"], folded["b2"],
      folded["w3"], folded["b3"])

    # (N, C, 2*HW) -> (N, 2C, H, W): row-major identical to
    # channel_shuffle(concat(x1, branch2), groups=2).  Pure metadata reshape.
    return out.reshape(N, C2, H, W)


# ----------------------------- parameters --------------------------------------------------

def init_params(key, C):
    """Raw (PyTorch-layout) parameters: conv weights + BatchNorm stats."""
    ks = jax.random.split(key, 15)

    def bn(k0, k1, k2, k3):
        gamma = 1.0 + 0.1 * jax.random.normal(k0, (C,), jnp.float32)
        beta = 0.1 * jax.random.normal(k1, (C,), jnp.float32)
        mean = 0.1 * jax.random.normal(k2, (C,), jnp.float32)
        var = jnp.abs(jax.random.normal(k3, (C,), jnp.float32)) + 0.5
        return gamma, beta, mean, var

    return {
        "w1": 0.1 * jax.random.normal(ks[12], (C, C), jnp.float32),      # (out, in)
        "wdw": 0.1 * jax.random.normal(ks[13], (C, 3, 3), jnp.float32),  # depthwise (C, kh, kw)
        "w3": 0.1 * jax.random.normal(ks[14], (C, C), jnp.float32),
        "bn1": bn(ks[0], ks[1], ks[2], ks[3]),
        "bn2": bn(ks[4], ks[5], ks[6], ks[7]),
        "bn3": bn(ks[8], ks[9], ks[10], ks[11]),
    }


def fold_params(p, eps=1e-5):
    """One-time prep: fold BN scales into conv weights; keep only per-channel biases."""
    def fold(bn_params):
        g, b, m, v = bn_params
        s = g / jnp.sqrt(v + eps)
        return s, b - m * s

    s1, b1 = fold(p["bn1"])
    s2, b2 = fold(p["bn2"])
    s3, b3 = fold(p["bn3"])
    C = p["w1"].shape[0]
    return {
        "w1": p["w1"] * s1[:, None],
        "b1": b1.reshape(C, 1),
        "wdw": (p["wdw"] * s2[:, None, None]).reshape(C, 9),
        "b2": b2.reshape(C, 1),
        "w3": p["w3"] * s3[:, None],
        "b3": b3.reshape(C, 1),
    }


# ----------------------------- reference (plain JAX, lax.conv) -----------------------------

def channel_shuffle_ref(x, groups):
    N, C, H, W = x.shape
    x = x.reshape(N, groups, C // groups, H, W)
    x = jnp.transpose(x, (0, 2, 1, 3, 4))
    return x.reshape(N, C, H, W)


def reference_forward(x_nchw, p, eps=1e-5):
    N, C2, H, W = x_nchw.shape
    C = C2 // 2
    x1 = x_nchw[:, :C]
    x2 = x_nchw[:, C:]
    dn = ("NCHW", "OIHW", "NCHW")
    hp = lax.Precision.HIGHEST

    def bn(y, bn_params):
        g, b, m, v = bn_params
        s = g / jnp.sqrt(v + eps)
        return y * s[None, :, None, None] + (b - m * s)[None, :, None, None]

    y = lax.conv_general_dilated(x2, p["w1"].reshape(C, C, 1, 1), (1, 1), "VALID",
                                 dimension_numbers=dn, precision=hp)
    y = jnp.maximum(bn(y, p["bn1"]), 0.0)
    y = lax.conv_general_dilated(y, p["wdw"].reshape(C, 1, 3, 3), (1, 1),
                                 ((1, 1), (1, 1)), dimension_numbers=dn,
                                 feature_group_count=C, precision=hp)
    y = bn(y, p["bn2"])
    y = lax.conv_general_dilated(y, p["w3"].reshape(C, C, 1, 1), (1, 1), "VALID",
                                 dimension_numbers=dn, precision=hp)
    y = jnp.maximum(bn(y, p["bn3"]), 0.0)
    return channel_shuffle_ref(jnp.concatenate([x1, y], axis=1), 2)


# ----------------------------- demo / self-check -------------------------------------------

if __name__ == "__main__":
    # InvertedResidual(inp=32, oup=32, stride=1, benchmodel=1)
    N, inp, H, W = 2, 32, 16, 16
    oup = 32
    oup_inc = oup // 2

    key = jax.random.PRNGKey(0)
    k_x, k_p = jax.random.split(key)
    x = jax.random.normal(k_x, (N, inp, H, W), jnp.float32)   # NCHW like PyTorch

    raw_params = init_params(k_p, oup_inc)
    folded = fold_params(raw_params)

    out = inverted_residual_forward(x, folded)
    out = jax.block_until_ready(out)
    assert out.shape == (N, oup, H, W)

    ref = reference_forward(x, raw_params)
    max_err = float(jnp.max(jnp.abs(out - ref)))
    assert jnp.allclose(out, ref, rtol=2e-3, atol=2e-3), f"mismatch, max_err={max_err}"

    print("KERNEL_OK")
</pallas_src>

<mosaic_0001>
module attributes {stable_mosaic.version = 11 : i64} {
  func.func @_inverted_residual_kernel(%arg0: i32, %arg1: memref<1x32x256xf32, #tpu.memory_space<vmem>>, %arg2: memref<9x256xf32, #tpu.memory_space<vmem>>, %arg3: memref<16x16xf32, #tpu.memory_space<vmem>>, %arg4: memref<16x1xf32, #tpu.memory_space<vmem>>, %arg5: memref<16x9xf32, #tpu.memory_space<vmem>>, %arg6: memref<16x1xf32, #tpu.memory_space<vmem>>, %arg7: memref<16x16xf32, #tpu.memory_space<vmem>>, %arg8: memref<16x1xf32, #tpu.memory_space<vmem>>, %arg9: memref<1x16x512xf32, #tpu.memory_space<vmem>>) attributes {dimension_semantics = [#tpu.dimension_semantics<parallel>], iteration_bounds = array<i64: 2>, scalar_prefetch = 0 : i64, scratch_operands = 0 : i64, tpu.core_type = #tpu.core_type<tc>, window_params = [{transform_indices = @transform_0, window_bounds = array<i64: 1, 32, 256>}, {pipeline_mode = #tpu.pipeline_mode<synchronous>, transform_indices = @transform_1, window_bounds = array<i64: 9, 256>}, {pipeline_mode = #tpu.pipeline_mode<synchronous>, transform_indices = @transform_2, window_bounds = array<i64: 16, 16>}, {pipeline_mode = #tpu.pipeline_mode<synchronous>, transform_indices = @transform_3, window_bounds = array<i64: 16, 1>}, {pipeline_mode = #tpu.pipeline_mode<synchronous>, transform_indices = @transform_4, window_bounds = array<i64: 16, 9>}, {pipeline_mode = #tpu.pipeline_mode<synchronous>, transform_indices = @transform_5, window_bounds = array<i64: 16, 1>}, {pipeline_mode = #tpu.pipeline_mode<synchronous>, transform_indices = @transform_6, window_bounds = array<i64: 16, 16>}, {pipeline_mode = #tpu.pipeline_mode<synchronous>, transform_indices = @transform_7, window_bounds = array<i64: 16, 1>}, {transform_indices = @transform_8, window_bounds = array<i64: 1, 16, 512>}]} {
    %c0_i32 = arith.constant 0 : i32
    %0 = arith.index_cast %c0_i32 : i32 to index
    %c0 = arith.constant 0 : index
    %c0_0 = arith.constant 0 : index
    %1 = vector.load %arg1[%0, %c0, %c0_0] : memref<1x32x256xf32, #tpu.memory_space<vmem>>, vector<1x16x256xf32>
    %2 = vector.shape_cast %1 : vector<1x16x256xf32> to vector<16x256xf32>
    %3 = arith.index_cast %c0_i32 : i32 to index
    %c16 = arith.constant 16 : index
    %c0_1 = arith.constant 0 : index
    %4 = vector.load %arg1[%3, %c16, %c0_1] : memref<1x32x256xf32, #tpu.memory_space<vmem>>, vector<1x16x256xf32>
    %5 = vector.shape_cast %4 : vector<1x16x256xf32> to vector<16x256xf32>
    %c0_2 = arith.constant 0 : index
    %c0_3 = arith.constant 0 : index
    %6 = vector.load %arg3[%c0_2, %c0_3] : memref<16x16xf32, #tpu.memory_space<vmem>>, vector<16x16xf32>
    %cst = arith.constant dense<0.000000e+00> : vector<16x256xf32>
    %7 = tpu.matmul %6, %5, %cst {dimension_numbers = #tpu.dot_dimension_numbers<[1], [0], [0], [1], [0, 0, 1, 1], [], []>} : vector<16x16xf32>, vector<16x256xf32>, vector<16x256xf32> -> vector<16x256xf32>
    %c0_4 = arith.constant 0 : index
    %c0_5 = arith.constant 0 : index
    %8 = vector.load %arg4[%c0_4, %c0_5] : memref<16x1xf32, #tpu.memory_space<vmem>>, vector<16x1xf32>
    %9 = vector.broadcast %8 : vector<16x1xf32> to vector<16x256xf32>
    %10 = arith.addf %7, %9 : vector<16x256xf32>
    %cst_6 = arith.constant 0.000000e+00 : f32
    %11 = vector.broadcast %cst_6 : f32 to vector<16x256xf32>
    %12 = arith.maximumf %10, %11 : vector<16x256xf32>
    %c0_7 = arith.constant 0 : index
    %c4 = arith.constant 4 : index
    %13 = vector.load %arg5[%c0_7, %c4] : memref<16x9xf32, #tpu.memory_space<vmem>>, vector<16x1xf32>
    %14 = vector.broadcast %13 : vector<16x1xf32> to vector<16x256xf32>
    %15 = arith.mulf %12, %14 : vector<16x256xf32>
    %c17_i32 = arith.constant 17 : i32
    %16 = tpu.dynamic_rotate %12 by %c17_i32 dim 1 : vector<16x256xf32>, i32 -> vector<16x256xf32>
    %c0_8 = arith.constant 0 : index
    %c0_9 = arith.constant 0 : index
    %17 = vector.load %arg5[%c0_8, %c0_9] : memref<16x9xf32, #tpu.memory_space<vmem>>, vector<16x1xf32>
    %18 = vector.broadcast %17 : vector<16x1xf32> to vector<16x256xf32>
    %19 = arith.mulf %16, %18 : vector<16x256xf32>
    %c0_10 = arith.constant 0 : index
    %c0_11 = arith.constant 0 : index
    %20 = vector.load %arg2[%c0_10, %c0_11] : memref<9x256xf32, #tpu.memory_space<vmem>>, vector<1x256xf32>
    %21 = vector.broadcast %20 : vector<1x256xf32> to vector<16x256xf32>
    %22 = arith.mulf %19, %21 : vector<16x256xf32>
    %23 = arith.addf %15, %22 : vector<16x256xf32>
    %c16_i32 = arith.constant 16 : i32
    %24 = tpu.dynamic_rotate %12 by %c16_i32 dim 1 : vector<16x256xf32>, i32 -> vector<16x256xf32>
    %c0_12 = arith.constant 0 : index
    %c1 = arith.constant 1 : index
    %25 = vector.load %arg5[%c0_12, %c1] : memref<16x9xf32, #tpu.memory_space<vmem>>, vector<16x1xf32>
    %26 = vector.broadcast %25 : vector<16x1xf32> to vector<16x256xf32>
    %27 = arith.mulf %24, %26 : vector<16x256xf32>
    %c1_13 = arith.constant 1 : index
    %c0_14 = arith.constant 0 : index
    %28 = vector.load %arg2[%c1_13, %c0_14] : memref<9x256xf32, #tpu.memory_space<vmem>>, vector<1x256xf32>
    %29 = vector.broadcast %28 : vector<1x256xf32> to vector<16x256xf32>
    %30 = arith.mulf %27, %29 : vector<16x256xf32>
    %31 = arith.addf %23, %30 : vector<16x256xf32>
    %c15_i32 = arith.constant 15 : i32
    %32 = tpu.dynamic_rotate %12 by %c15_i32 dim 1 : vector<16x256xf32>, i32 -> vector<16x256xf32>
    %c0_15 = arith.constant 0 : index
    %c2 = arith.constant 2 : index
    %33 = vector.load %arg5[%c0_15, %c2] : memref<16x9xf32, #tpu.memory_space<vmem>>, vector<16x1xf32>
    %34 = vector.broadcast %33 : vector<16x1xf32> to vector<16x256xf32>
    %35 = arith.mulf %32, %34 : vector<16x256xf32>
    %c2_16 = arith.constant 2 : index
    %c0_17 = arith.constant 0 : index
    %36 = vector.load %arg2[%c2_16, %c0_17] : memref<9x256xf32, #tpu.memory_space<vmem>>, vector<1x256xf32>
    %37 = vector.broadcast %36 : vector<1x256xf32> to vector<16x256xf32>
    %38 = arith.mulf %35, %37 : vector<16x256xf32>
    %39 = arith.addf %31, %38 : vector<16x256xf32>
    %c1_i32 = arith.constant 1 : i32
    %40 = tpu.dynamic_rotate %12 by %c1_i32 dim 1 : vector<16x256xf32>, i32 -> vector<16x256xf32>
    %c0_18 = arith.constant 0 : index
    %c3 = arith.constant 3 : index
    %41 = vector.load %arg5[%c0_18, %c3] : memref<16x9xf32, #tpu.memory_space<vmem>>, vector<16x1xf32>
    %42 = vector.broadcast %41 : vector<16x1xf32> to vector<16x256xf32>
    %43 = arith.mulf %40, %42 : vector<16x256xf32>
    %c3_19 = arith.constant 3 : index
    %c0_20 = arith.constant 0 : index
    %44 = vector.load %arg2[%c3_19, %c0_20] : memref<9x256xf32, #tpu.memory_space<vmem>>, vector<1x256xf32>
    %45 = vector.broadcast %44 : vector<1x256xf32> to vector<16x256xf32>
    %46 = arith.mulf %43, %45 : vector<16x256xf32>
    %47 = arith.addf %39, %46 : vector<16x256xf32>
    %c255_i32 = arith.constant 255 : i32
    %48 = tpu.dynamic_rotate %12 by %c255_i32 dim 1 : vector<16x256xf32>, i32 -> vector<16x256xf32>
    %c0_21 = arith.constant 0 : index
    %c5 = arith.constant 5 : index
    %49 = vector.load %arg5[%c0_21, %c5] : memref<16x9xf32, #tpu.memory_space<vmem>>, vector<16x1xf32>
    %50 = vector.broadcast %49 : vector<16x1xf32> to vector<16x256xf32>
    %51 = arith.mulf %48, %50 : vector<16x256xf32>
    %c5_22 = arith.constant 5 : index
    %c0_23 = arith.constant 0 : index
    %52 = vector.load %arg2[%c5_22, %c0_23] : memref<9x256xf32, #tpu.memory_space<vmem>>, vector<1x256xf32>
    %53 = vector.broadcast %52 : vector<1x256xf32> to vector<16x256xf32>
    %54 = arith.mulf %51, %53 : vector<16x256xf32>
    %55 = arith.addf %47, %54 : vector<16x256xf32>
    %c241_i32 = arith.constant 241 : i32
    %56 = tpu.dynamic_rotate %12 by %c241_i32 dim 1 : vector<16x256xf32>, i32 -> vector<16x256xf32>
    %c0_24 = arith.constant 0 : index
    %c6 = arith.constant 6 : index
    %57 = vector.load %arg5[%c0_24, %c6] : memref<16x9xf32, #tpu.memory_space<vmem>>, vector<16x1xf32>
    %58 = vector.broadcast %57 : vector<16x1xf32> to vector<16x256xf32>
    %59 = arith.mulf %56, %58 : vector<16x256xf32>
    %c6_25 = arith.constant 6 : index
    %c0_26 = arith.constant 0 : index
    %60 = vector.load %arg2[%c6_25, %c0_26] : memref<9x256xf32, #tpu.memory_space<vmem>>, vector<1x256xf32>
    %61 = vector.broadcast %60 : vector<1x256xf32> to vector<16x256xf32>
    %62 = arith.mulf %59, %61 : vector<16x256xf32>
    %63 = arith.addf %55, %62 : vector<16x256xf32>
    %c240_i32 = arith.constant 240 : i32
    %64 = tpu.dynamic_rotate %12 by %c240_i32 dim 1 : vector<16x256xf32>, i32 -> vector<16x256xf32>
    %c0_27 = arith.constant 0 : index
    %c7 = arith.constant 7 : index
    %65 = vector.load %arg5[%c0_27, %c7] : memref<16x9xf32, #tpu.memory_space<vmem>>, vector<16x1xf32>
    %66 = vector.broadcast %65 : vector<16x1xf32> to vector<16x256xf32>
    %67 = arith.mulf %64, %66 : vector<16x256xf32>
    %c7_28 = arith.constant 7 : index
    %c0_29 = arith.constant 0 : index
    %68 = vector.load %arg2[%c7_28, %c0_29] : memref<9x256xf32, #tpu.memory_space<vmem>>, vector<1x256xf32>
    %69 = vector.broadcast %68 : vector<1x256xf32> to vector<16x256xf32>
    %70 = arith.mulf %67, %69 : vector<16x256xf32>
    %71 = arith.addf %63, %70 : vector<16x256xf32>
    %c239_i32 = arith.constant 239 : i32
    %72 = tpu.dynamic_rotate %12 by %c239_i32 dim 1 : vector<16x256xf32>, i32 -> vector<16x256xf32>
    %c0_30 = arith.constant 0 : index
    %c8 = arith.constant 8 : index
    %73 = vector.load %arg5[%c0_30, %c8] : memref<16x9xf32, #tpu.memory_space<vmem>>, vector<16x1xf32>
    %74 = vector.broadcast %73 : vector<16x1xf32> to vector<16x256xf32>
    %75 = arith.mulf %72, %74 : vector<16x256xf32>
    %c8_31 = arith.constant 8 : index
    %c0_32 = arith.constant 0 : index
    %76 = vector.load %arg2[%c8_31, %c0_32] : memref<9x256xf32, #tpu.memory_space<vmem>>, vector<1x256xf32>
    %77 = vector.broadcast %76 : vector<1x256xf32> to vector<16x256xf32>
    %78 = arith.mulf %75, %77 : vector<16x256xf32>
    %79 = arith.addf %71, %78 : vector<16x256xf32>
    %c0_33 = arith.constant 0 : index
    %c0_34 = arith.constant 0 : index
    %80 = vector.load %arg6[%c0_33, %c0_34] : memref<16x1xf32, #tpu.memory_space<vmem>>, vector<16x1xf32>
    %81 = vector.broadcast %80 : vector<16x1xf32> to vector<16x256xf32>
    %82 = arith.addf %79, %81 : vector<16x256xf32>
    %c0_35 = arith.constant 0 : index
    %c0_36 = arith.constant 0 : index
    %83 = vector.load %arg7[%c0_35, %c0_36] : memref<16x16xf32, #tpu.memory_space<vmem>>, vector<16x16xf32>
    %cst_37 = arith.constant dense<0.000000e+00> : vector<16x256xf32>
    %84 = tpu.matmul %83, %82, %cst_37 {dimension_numbers = #tpu.dot_dimension_numbers<[1], [0], [0], [1], [0, 0, 1, 1], [], []>} : vector<16x16xf32>, vector<16x256xf32>, vector<16x256xf32> -> vector<16x256xf32>
    %c0_38 = arith.constant 0 : index
    %c0_39 = arith.constant 0 : index
    %85 = vector.load %arg8[%c0_38, %c0_39] : memref<16x1xf32, #tpu.memory_space<vmem>>, vector<16x1xf32>
    %86 = vector.broadcast %85 : vector<16x1xf32> to vector<16x256xf32>
    %87 = arith.addf %84, %86 : vector<16x256xf32>
    %cst_40 = arith.constant 0.000000e+00 : f32
    %88 = vector.broadcast %cst_40 : f32 to vector<16x256xf32>
    %89 = arith.maximumf %87, %88 : vector<16x256xf32>
    %90 = arith.index_cast %c0_i32 : i32 to index
    %c0_41 = arith.constant 0 : index
    %c0_42 = arith.constant 0 : index
    %91 = vector.load %arg9[%90, %c0_41, %c0_42] : memref<1x16x512xf32, #tpu.memory_space<vmem>>, vector<1x16x256xf32>
    %92 = vector.shape_cast %91 : vector<1x16x256xf32> to vector<16x256xf32>
    %93 = vector.shape_cast %2 : vector<16x256xf32> to vector<1x16x256xf32>
    tpu.vector_store %arg9[%90, %c0_41, %c0_42], %93 {strides = array<i32>} : memref<1x16x512xf32, #tpu.memory_space<vmem>>, vector<1x16x256xf32>,
    %94 = arith.index_cast %c0_i32 : i32 to index
    %c0_43 = arith.constant 0 : index
    %c256 = arith.constant 256 : index
    %95 = vector.load %arg9[%94, %c0_43, %c256] : memref<1x16x512xf32, #tpu.memory_space<vmem>>, vector<1x16x256xf32>
    %96 = vector.shape_cast %95 : vector<1x16x256xf32> to vector<16x256xf32>
    %97 = vector.shape_cast %89 : vector<16x256xf32> to vector<1x16x256xf32>
    tpu.vector_store %arg9[%94, %c0_43, %c256], %97 {strides = array<i32>} : memref<1x16x512xf32, #tpu.memory_space<vmem>>, vector<1x16x256xf32>,
    %c1_i32_44 = arith.constant 1 : i32
    return
  }
  func.func @transform_0(%arg0: i32) -> (i32, i32, i32) {
    %c0_i32 = arith.constant 0 : i32
    %c0_i32_0 = arith.constant 0 : i32
    %c0_i32_1 = arith.constant 0 : i32
    return %arg0, %c0_i32, %c0_i32_0 : i32, i32, i32
  }
  func.func @transform_1(%arg0: i32) -> (i32, i32) {
    %c0_i32 = arith.constant 0 : i32
    %c0_i32_0 = arith.constant 0 : i32
    %c0_i32_1 = arith.constant 0 : i32
    return %c0_i32, %c0_i32_0 : i32, i32
  }
  func.func @transform_2(%arg0: i32) -> (i32, i32) {
    %c0_i32 = arith.constant 0 : i32
    %c0_i32_0 = arith.constant 0 : i32
    %c0_i32_1 = arith.constant 0 : i32
    return %c0_i32, %c0_i32_0 : i32, i32
  }
  func.func @transform_3(%arg0: i32) -> (i32, i32) {
    %c0_i32 = arith.constant 0 : i32
    %c0_i32_0 = arith.constant 0 : i32
    %c0_i32_1 = arith.constant 0 : i32
    return %c0_i32, %c0_i32_0 : i32, i32
  }
  func.func @transform_4(%arg0: i32) -> (i32, i32) {
    %c0_i32 = arith.constant 0 : i32
    %c0_i32_0 = arith.constant 0 : i32
    %c0_i32_1 = arith.constant 0 : i32
    return %c0_i32, %c0_i32_0 : i32, i32
  }
  func.func @transform_5(%arg0: i32) -> (i32, i32) {
    %c0_i32 = arith.constant 0 : i32
    %c0_i32_0 = arith.constant 0 : i32
    %c0_i32_1 = arith.constant 0 : i32
    return %c0_i32, %c0_i32_0 : i32, i32
  }
  func.func @transform_6(%arg0: i32) -> (i32, i32) {
    %c0_i32 = arith.constant 0 : i32
    %c0_i32_0 = arith.constant 0 : i32
    %c0_i32_1 = arith.constant 0 : i32
    return %c0_i32, %c0_i32_0 : i32, i32
  }
  func.func @transform_7(%arg0: i32) -> (i32, i32) {
    %c0_i32 = arith.constant 0 : i32
    %c0_i32_0 = arith.constant 0 : i32
    %c0_i32_1 = arith.constant 0 : i32
    return %c0_i32, %c0_i32_0 : i32, i32
  }
  func.func @transform_8(%arg0: i32) -> (i32, i32, i32) {
    %c0_i32 = arith.constant 0 : i32
    %c0_i32_0 = arith.constant 0 : i32
    %c0_i32_1 = arith.constant 0 : i32
    return %arg0, %c0_i32, %c0_i32_0 : i32, i32, i32
  }
}

</mosaic_0001>

<bundles_post_ra>
// kernel: tpu_custom_call.1
= control target key start
LH: loop header
LB: loop body
LE: loop exit
PB: predicated region body
PF: predicated region fallthrough
CT: control target
= control target key end

     0   :  { %13 = vsyncpa [#allocation3], 0  ;;  %s1999_s0 = inlined_call_operand.hbm [shape: f32[2,32,256], index: 0, kind: input, shape index: {}]   ;;  %s2000_s1 = inlined_call_operand.vmem [shape: f32[9,256], index: 1, kind: input, shape index: {}]   ;;  %s2001_s2 = inlined_call_operand.vmem [shape: f32[16,16], index: 2, kind: input, shape index: {}]   ;;  %s2002_s3 = inlined_call_operand.vmem [shape: f32[16,1], index: 3, kind: input, shape index: {}]   ;;  %s2003_s4 = inlined_call_operand.vmem [shape: f32[16,9], index: 4, kind: input, shape index: {}]   ;;  %s2004_s5 = inlined_call_operand.vmem [shape: f32[16,1], index: 5, kind: input, shape index: {}]   ;;  %s2005_s6 = inlined_call_operand.hbm [shape: f32[16,16], index: 6, kind: input, shape index: {}]   ;;  %s2006_s7 = inlined_call_operand.vmem [shape: f32[16,1], index: 7, kind: input, shape index: {}]   ;;  %s2007_s8 = inlined_call_operand.hbm [shape: f32[2,16,512], index: 8, kind: output, shape index: {}]  }
   0x1   :  { %15 = vsyncpa [#allocation3 + $0x1], 0 }
   0x2   :  { %16 = vsyncpa [#allocation6], 0 }
   0x3   :  { %17 = vsyncpa [#allocation4], 0 }
   0x4   :  { %19 = vsyncpa [#allocation4 + $0x1], 0  ;;  %s1395_s27 = smov 0   ;;  %s1397_s28 = smov 0  }
   0x5   :  { %s1399_s29 = smov 0   ;;  %s1401_s30 = smov 0  }
   0x6 LB: > { %s1416_s9 = sadd.s32 4294967295, %s1321_s30   ;;  %s1056_s10 = sadd.s32 4294967294, %s1321_s30   ;;  %s1321_s30 = sphi %s1401_s30, %s2027_s30   ;;  %s1317_s29 = sphi %s1399_s29, %s2030_s29   ;;  %s1313_s28 = sphi %s1397_s28, %s2029_s28   ;;  %s1309_s27 = sphi %s1395_s27, %s2028_s27  }
   0x7   : > { %p45_p0 = scmp.ne.s32.totalorder %s1313_s28, %s1309_s27  ;;  %p2008_p1 = scmp.eq.s32.totalorder %s1416_s9, 0 }
   0x8   : > { %p222_p3 = scmp.eq.s32.totalorder %s1056_s10, 1  ;;  %p1057_p5 = scmp.ge.s32.totalorder %s1321_s30, 1 }
   0x9   : > { %p1425_p4 = por %p2008_p1, %p45_p0  ;;  %p229_p7 = scmp.lt.s32.totalorder %s1321_s30, 3 }
   0xa   : > { %p1430_p6 = por %p222_p3, %p45_p0  ;;  %s1323_s14 = smov [#allocation5]  }
   0xb   : > { %s2013_s11 = scalar_select %p1425_p4, 1, 0 }
   0xc   : > { %s2014_s12 = scalar_select %p1430_p6, 1, 0 }
   0xd   : > { %p1435_p8 = pnand %p1057_p5, %p229_p7  ;;  %s256_s15 = sshll.u32 %s1323_s14, 4  ;;  %s1439_s15 = int_to_ptr.vmem [resolvable:$true] %s256_s15 }
   0xe   : > { %s1451_s17 = sadd.s32 1, %s1321_s30   ;;  %s32_s18 = sadd.s32 1, %s1317_s29 }
   0xf   : > { %s2015_s13 = scalar_select %p1435_p8, 1, 0 }
  0x10   : > { %p1101_p9 = pneg %p1435_p8  ;;  %2017 = sst [smem:[#allocation11_spill]] %s1451_s17 }
  0x11   : > { %s29_s19 = ssub.s32 %s1321_s30, %s1451_s17  ;;  %s1193_s22 = scalar_lea.hbm %s2005_s6, 256 }
  0x12   : > { %p1446_p11 = pnand %p1101_p9, %p2008_p1  ;;  %p1194_p12 = scmp.ne.s32.totalorder %s2005_s6, %s1193_s22 }
  0x13   : > { %p1200_p5 = scmp.lt.u32.totalorder %s1193_s22, %s2005_s6 }
  0x14   : > { %p1195_p13 = pneg %p1446_p11 }
  0x16   : > { %p1196_p0 = pnand %p1195_p13, %p1194_p12 }
  0x18   : > { %p1197_p3 = pneg %p1196_p0 }
  0x1a   : > { %p1202_p7 = pnand %p1200_p5, %p1197_p3 }
  0x1c   : > { %1205 = shalt.err (!%p1202_p7)
}
  0x1d   : > { %s1206_s10 = scalar_lea.vmem %s1439_s15, 256  ;;  %p1214_p2 = scmp.lt.s32.totalorder %s1439_s15, %s1439_s15 }
  0x1e   : > { %p1207_p9 = scmp.ne.s32.totalorder %s1439_s15, %s1206_s10  ;;  %p1215_p6 = scmp.lt.s32.totalorder %s1206_s10, %s1206_s10 }
  0x20   : > { %p1209_p10 = pnand %p1207_p9, %p1195_p13  ;;  %p1216_p4 = por %p1215_p6, %p1214_p2 }
  0x22   : > { %p1210_p1 = pneg %p1209_p10 }
  0x24   : > { %p1217_p8 = pnand %p1216_p4, %p1210_p1 }
  0x26   : > { %1220 = shalt.err (!%p1217_p8)
}
  0x27   : > { %s1324_s14 = smov 128   ;;  %s1325_s20 = smov 8  }
  0x28   : > { %1104 = dma.hbm_to_vmem [thread:$0]  (!%p1446_p11), %s2005_s6, 256, %s1439_s15, [#allocation6], %s1324_s14, %s1324_s14, %s1325_s20  }
  0x29   : > { %p30_p2 = scmp.eq.s32.totalorder %s29_s19, 0  ;;  %p39_p1 = scmp.ne.s32.totalorder %s1317_s29, %s1313_s28 }
  0x2a   : > { %p40_p4 = scmp.eq.s32.totalorder %s1321_s30, 0  ;;  %p1114_p6 = scmp.lt.s32.totalorder %s1321_s30, 2 }
  0x2b   : > { %s1482_s23 = scalar_select %p30_p2, %s1317_s29, %s32_s18  }
  0x2c   : > { %p41_p8 = por %p40_p4, %p39_p1  ;;  %p2018_p10 = scmp.eq.s32.totalorder %s1416_s9, 1 }
  0x2d   : > { %s273_s25 = sand.u32 1, %s1317_s29   ;;  %s1083_s26 = sshll.u32 %s1321_s30, 10 }
  0x2e   : > { %p1486_p12 = por %p2018_p10, %p39_p1  ;;  %s1060_s10 = sshll.u32 %s273_s25, 6 }
  0x2f   : > { %s1495_s21 = scalar_lea.hbm %s1999_s0, %s1083_s26  ;;  %s277_s15 = scalar_lea.vmem [#allocation2], %s1060_s10 }
  0x30   : > { %s284_s18 = sshll.u32 %s277_s15, 4  ;;  %p1497_p11 = pnand %p1114_p6, %p41_p8  ;;  %s1501_s18 = int_to_ptr.vmem [resolvable:$true] %s284_s18 }
  0x31   : > { %s1503_s14 = scalar_lea.sflag [#allocation3], %s273_s25  ;;  %s1221_s20 = scalar_lea.hbm %s1495_s21, 1024 }
  0x32   : > { %p1222_p13 = scmp.ne.s32.totalorder %s1495_s21, %s1221_s20  ;;  %p1223_p0 = pneg %p1497_p11 }
  0x33   : > { %s1226_s26 = scalar_lea.hbm %s1999_s0, 2048  ;;  %p1227_p7 = scmp.lt.u32.totalorder %s1495_s21, %s1999_s0 }
  0x34   : > { %p1224_p3 = pnand %p1223_p0, %p1222_p13  ;;  %p1228_p9 = scmp.lt.u32.totalorder %s1226_s26, %s1221_s20 }
  0x35   : > { %p1230_p1 = scmp.lt.u32.totalorder %s1221_s20, %s1495_s21 }
  0x36   : > { %p1225_p5 = pneg %p1224_p3  ;;  %p1229_p2 = por %p1228_p9, %p1227_p7 }
  0x38   : > { %p1231_p4 = por %p1230_p1, %p1229_p2 }
  0x3a   : > { %p1232_p6 = pnand %p1231_p4, %p1225_p5 }
  0x3c   : > { %1235 = shalt.err (!%p1232_p6)
}
  0x3d   : > { %s1236_s25 = scalar_lea.vmem %s1501_s18, 1024  ;;  %s1326_s15 = smov [#allocation2]  }
  0x3e   : > { %p1237_p8 = scmp.ne.s32.totalorder %s1501_s18, %s1236_s25  ;;  %s1241_s17 = sshll.u32 %s1326_s15, 4  ;;  %s1242_s17 = int_to_ptr.vmem [resolvable:$false] %s1241_s17 }
  0x3f   : > { %s1243_s22 = scalar_lea.vmem %s1242_s17, 2048  ;;  %p1244_p3 = scmp.lt.s32.totalorder %s1501_s18, %s1242_s17 }
  0x40   : > { %p1239_p10 = pnand %p1237_p8, %p1223_p0  ;;  %p1245_p7 = scmp.lt.s32.totalorder %s1243_s22, %s1236_s25 }
  0x42   : > { %p1240_p13 = pneg %p1239_p10  ;;  %p1246_p9 = por %p1245_p7, %p1244_p3 }
  0x44   : > { %p1247_p2 = pnand %p1246_p9, %p1240_p13 }
  0x46   : > { %1250 = shalt.err (!%p1247_p2)
}
  0x47   : > { %s1327_s20 = smov 256   ;;  %s1328_s26 = smov 16  }
  0x48   : > { %1108 = dma.hbm_to_vmem [thread:$0]  (!%p1497_p11), %s1495_s21, 1024, %s1501_s18, %s1503_s14, %s1327_s20, %s1327_s20, %s1328_s26  }
  0x49   : > { %p2021_p0 = scmp.ne.s32.totalorder %s2015_s13, 0 }
  0x4a   : > { %s1534_s10 = sand.u32 (!%p2021_p0), 1, %s1313_s28   ;;  %p2022_p5 = scmp.ne.s32.totalorder (!%p2021_p0), %s2013_s11, 0 }
  0x4b   : > { %296 = sbr.rel (%p2021_p0) target bundleno = 753 (0x2f1), region = 52  ;;  %s1064_s16 = sshll.u32 (!%p2021_p0), %s1534_s10, 6 }
  0x4c   : > { %s299_s25 = scalar_lea.sflag (!%p2021_p0), [#allocation3], %s1534_s10  ;;  %s1540_s15 = scalar_lea.vmem (!%p2021_p0), [#allocation2], %s1064_s16 }
  0x52   : > { %1296 = dma.done.wait (%p2022_p5), %s299_s25, 1024  }
  0x53   : > { %1298 = vsyncadd (%p2022_p5), %s299_s25, 4294966272  ;;  %p2023_p11 = scmp.eq.s32.totalorder %s1416_s9, 0 }
  0x55   : > { %1300 = dma.done.wait (%p2023_p11), [#allocation6], 256   ;;  %p2024_p1 = pmov %p2023_p11 }
  0x56   : > { %v1329_v0 = vmov 0.0   ;;  %v1330_v1 = vmov 0   ;;  %v344_v2 = vld [vmem:[%s1540_s15 + $0x28] sm:$0xff]  ;;  %v346_v3 = vld [vmem:[%s1540_s15 + $0x38] sm:$0xff]  ;;  %v343_v4 = vld [vmem:[%s1540_s15 + $0x20] sm:$0xff]  ;;  %vm361_vm0 = vcmask 130048  }
  0x57   : > { %1302 = vsyncadd (%p2024_p1), [#allocation6], 4294967040  ;;  %432 = vmatprep.mubr.f32.mxu0 %v1329_v0  ;;  %1174 = vset.pattern.permute.xlu0 %v1330_v1  ;;  %v1085_v5 = vpack.c.bf16 %v346_v3, %v344_v2  ;;  %v345_v6 = vld [vmem:[%s1540_s15 + $0x30] sm:$0xff]  ;;  %v349_v8 = vld [vmem:[%s2002_s3] sm:$0xff]  ;;  %v1331_v14 = vmov 4   ;;  %v1332_v15 = vmov 1  }
  0x58   : > { %1175 = vset.pattern.permute.xlu1 %v1330_v1  ;;  %934 = vmatprep.mubr.f32.mxu1 %v1329_v0  ;;  %v1087_v7 = vpack.c.bf16 %v345_v6, %v343_v4  ;;  %v449_v9 = vld [vmem:[%s2003_s4] sm:$0xff]  ;;  %v350_v11 = vld [vmem:[%s2002_s3 + $0x8] sm:$0xff]  ;;  %v1333_v16 = vmov 3   ;;  %v1334_v17 = vmov 2   ;;  %v1335_v18 = vmov 5   ;;  %s1339_s13 = smov 16  }
  0x59   : > { %1086 = vmatprep.subr.bf16.mxu0 %v1085_v5  ;;  %353 = vperm.xlu0 %1174, %v349_v8   ;;  %v347_v10 = vld [vmem:[%s2001_s2] sm:$0xff]  ;;  %v450_v12 = vld [vmem:[%s2003_s4 + $0x8] sm:$0xff]  ;;  %v1336_v19 = vmov 6   ;;  %v1337_v20 = vmov 7   ;;  %v1338_v21 = vmov 8   ;;  %s1340_s21 = smov 17   ;;  %v473_v8 = vlaneseq }
  0x5a   : > { %1088 = vmatpush1.bf16.msra.mxu0 %v1087_v7  ;;  %481 = vperm.xlu1 %1175, %v449_v9   ;;  %v348_v13 = vld [vmem:[%s2001_s2 + $0x8] sm:$0xff]  ;;  %s1341_s18 = smov 15   ;;  %s1342_s19 = smov 1   ;;  %v834_v45 = vld [vmem:[%s2004_s5] sm:$0xff]  ;;  %v341_v55 = vld [vmem:[%s1540_s15 + $0x10] sm:$0xff] }
  0x5b   : > { %s1343_s14 = smov 127   ;;  %s1344_s17 = smov 113   ;;  %v835_v43 = vld [vmem:[%s2004_s5 + $0x8] sm:$0xff]  ;;  %v852_v47 = vld [vmem:[%s2006_s7] sm:$0xff]  ;;  %v342_v56 = vld [vmem:[%s1540_s15 + $0x18] sm:$0xff] }
  0x5c   : > { %s1345_s22 = smov 112   ;;  %s1346_s20 = smov 111   ;;  %v853_v48 = vld [vmem:[%s2006_s7 + $0x8] sm:$0xff]  ;;  %v339_v53 = vld [vmem:[%s1540_s15] sm:$0xff] }
  0x5d   : > { %1067 = vmatmul.mubr.msk.f32.vlgmr.msra.gmra.mrb[0].mxu0 %vm361_vm0, %v347_v10  ;;  %358 = vperm.xlu0 %1174, %v350_v11   ;;  %v340_v54 = vld [vmem:[%s1540_s15 + $0x8] sm:$0xff]  ;;  %v1676_v11 = vand.u32 127, %v473_v8  ;;  %s1084_s25 = sshll.u32 %s1416_s9, 10  ;;  %s960_s9 = scalar_lea.sflag [#allocation4], %s1534_s10 }
  0x5e   : > { %438 = vmatprep.mubr.f32.mxu0 %v1329_v0  ;;  %485 = vperm.xlu1 %1175, %v450_v12  }
  0x5f   : > { %vm475_vm1 = vcmp.lt.s32.totalorder %v1676_v11, 17  ;;  %vm566_vm2 = vcmp.lt.s32.totalorder %v1676_v11, 15  ;;  %vm520_vm3 = vcmp.lt.s32.totalorder %v1676_v11, 16  ;;  %vm612_vm4 = vcmp.lt.s32.totalorder %v1676_v11, 1 }
  0x60   : > { %vm658_vm5 = vcmp.lt.s32.totalorder %v1676_v11, 127  ;;  %vm704_vm6 = vcmp.lt.s32.totalorder %v1676_v11, 113  ;;  %vm750_vm7 = vcmp.lt.s32.totalorder %v1676_v11, 112  ;;  %vm796_vm8 = vcmp.lt.s32.totalorder %v1676_v11, 111 }
  0x61   : > { %1068 = vmatmul.mubr.msk.f32.gmra.mrb[2].mxu0 %vm361_vm0, %v348_v13  ;;  %1176 = vset.pattern.permute.xlu0 %v1331_v14 }
  0x62   : > { %453 = vperm.xlu0 %1176, %v449_v9   ;;  %1177 = vset.pattern.permute.xlu1 %v1331_v14 }
  0x63   : > { %458 = vperm.xlu1 %1177, %v450_v12  }
  0x66   : > { %1179 = vset.pattern.permute.xlu0 %v1332_v15 }
  0x67   : > { %1178 = vset.pattern.permute.xlu1 %v1332_v15  ;;  %530 = vperm.xlu0 %1179, %v450_v12  }
  0x68   : > { %526 = vperm.xlu1 %1178, %v449_v9  }
  0x6b   : > { %1181 = vset.pattern.permute.xlu0 %v1333_v16 }
  0x6c   : > { %1180 = vset.pattern.permute.xlu1 %v1334_v17  ;;  %618 = vperm.xlu0 %1181, %v449_v9  }
  0x6d   : > { %572 = vperm.xlu1 %1180, %v449_v9  }
  0x70   : > { %1184 = vset.pattern.permute.xlu0 %v1335_v18 }
  0x71   : > { %576 = vperm.xlu1 %1180, %v450_v12   ;;  %668 = vperm.xlu0 %1184, %v450_v12  }
  0x75   : > { %1182 = vset.pattern.permute.xlu1 %v1333_v16  ;;  %1185 = vset.pattern.permute.xlu0 %v1336_v19 }
  0x76   : > { %622 = vperm.xlu1 %1182, %v450_v12   ;;  %710 = vperm.xlu0 %1185, %v449_v9  }
  0x7a   : > { %1183 = vset.pattern.permute.xlu1 %v1335_v18  ;;  %1188 = vset.pattern.permute.xlu0 %v1337_v20 }
  0x7b   : > { %664 = vperm.xlu1 %1183, %v449_v9   ;;  %760 = vperm.xlu0 %1188, %v450_v12  }
  0x7f   : > { %1186 = vset.pattern.permute.xlu1 %v1336_v19  ;;  %1189 = vset.pattern.permute.xlu0 %v1338_v21  ;;  %v492_v19 = vld [vmem:[%s2000_s1] ss:$8 sm:$0x3] }
  0x80   : > { %714 = vperm.xlu1 %1186, %v450_v12   ;;  %802 = vperm.xlu0 %1189, %v449_v9  }
  0x84   : > { %1187 = vset.pattern.permute.xlu1 %v1337_v20  ;;  %1192 = vset.pattern.permute.xlu0 %v1330_v1 }
  0x85   : > { %756 = vperm.xlu1 %1187, %v449_v9  }
  0x89   : > { %1190 = vset.pattern.permute.xlu1 %v1338_v21 }
  0x8a   : > { %806 = vperm.xlu1 %1190, %v450_v12   ;;  %v495_v12 = vshrl.u32 %v473_v8, 7 }
  0x8c   : > { %v1683_v15 = vsub.s32 0, %v495_v12  ;;  %v1685_v16 = vsub.s32 1, %v495_v12 }
  0x8e   : > { %1191 = vset.pattern.permute.xlu1 %v1330_v1 }
  0xd8   : > { %v354_v22 = vpop.permute.xlu0 %353 }
  0xd9   : > { %v1581_v23 = vpop.permute.xlu1 %481 }
  0xdc   : > { %v359_v24 = vpop.permute.xlu0 %358 }
  0xdd   : > { %v1583_v26 = vpop.permute.xlu1 %485 }
  0xe1   : > { %v1585_v29 = vpop.permute.xlu0 %453 }
  0xe2   : > { %v459_v37 = vpop.permute.xlu1 %458 }
  0xe6   : > { %v1638_v50 = vpop.permute.xlu0 %530 }
  0xe7   : > { %v1622_v44 = vpop.permute.xlu1 %526 }
  0xeb   : > { %v1642_v52 = vpop.permute.xlu0 %618 }
  0xec   : > { %v1628_v46 = vpop.permute.xlu1 %572 }
  0xf0   : > { %v1636_v49 = vpop.permute.xlu1 %576  ;;  %v1658_v58 = vpop.permute.xlu0 %668 }
  0xf5   : > { %v1640_v51 = vpop.permute.xlu1 %622  ;;  %v1662_v60 = vpop.permute.xlu0 %710 }
  0xfa   : > { %v1656_v57 = vpop.permute.xlu1 %664  ;;  %v1666_v62 = vpop.permute.xlu0 %760 }
  0xff   : > { %v1660_v59 = vpop.permute.xlu1 %714  ;;  %v1670_v1 = vpop.permute.xlu0 %802 }
 0x104   : > { %v1664_v61 = vpop.permute.xlu1 %756 }
 0x109   : > { %v1668_v63 = vpop.permute.xlu1 %806 }
 0x130   : > { %v434_v25 = vpop.f32.mrb[0].mxu0 }
 0x131   : > { %v435_v27 = vadd.f32 %v434_v25, %v354_v22  ;;  %v436_v28 = vpop.f32.mrb[1].mxu0 }
 0x132   : > { %v437_v31 = vadd.f32 %v436_v28, %v354_v22  ;;  %v1700_v22 = vrot.slane %v492_v19, %v1683_v15  ;;  %v1070_v28 = vld [vmem:[%s2000_s1 + $0x2] ss:$8 sm:$0x3] }
 0x133   : > { %v445_v30 = vmax.f32 %v435_v27, 0.0 }
 0x134   : > { %v440_v32 = vpop.f32.mrb[2].mxu0  ;;  %v1592_v38 = vmax.f32 %v437_v31, 0.0 }
 0x135   : > { %v1588_v33 = vmul.f32 %v1585_v29, %v445_v30  ;;  %v441_v34 = vadd.f32 %v440_v32, %v359_v24  ;;  %v442_v35 = vpop.f32.mrb[3].mxu0  ;;  %512 = vrot.lane.b32.xlu1 %v445_v30, %s1339_s13  ;;  %465 = vrot.lane.b32.xlu0 %v445_v30, %s1340_s21  ;;  %v1069_v32 = vld [vmem:[%s2000_s1 + $0x1] ss:$8 sm:$0x3] }
 0x136   : > { %v443_v36 = vadd.f32 %v442_v35, %v359_v24  ;;  %v1703_v24 = vrot.slane %v492_v19, %v1685_v16 }
 0x137   : > { %v447_v39 = vmax.f32 %v441_v34, 0.0 }
 0x138   : > { %v448_v40 = vmax.f32 %v443_v36, 0.0  ;;  %v1726_v36 = vrot.slane %v1070_v28, %v1685_v16 }
 0x139   : > { %v1594_v41 = vmul.f32 %v459_v37, %v447_v39  ;;  %558 = vrot.lane.b32.xlu1 %v445_v30, %s1341_s18  ;;  %469 = vrot.lane.b32.xlu0 %v1592_v38, %s1340_s21 }
 0x13a   : > { %v1599_v42 = vmul.f32 %v459_v37, %v448_v40 }
 0x13d   : > { %604 = vrot.lane.b32.xlu1 %v445_v30, %s1342_s19  ;;  %562 = vrot.lane.b32.xlu0 %v1592_v38, %s1341_s18 }
 0x141   : > { %650 = vrot.lane.b32.xlu1 %v445_v30, %s1343_s14  ;;  %654 = vrot.lane.b32.xlu0 %v1592_v38, %s1343_s14 }
 0x145   : > { %696 = vrot.lane.b32.xlu1 %v445_v30, %s1344_s17  ;;  %514 = vrot.lane.b32.xlu0 %v447_v39, %s1339_s13 }
 0x149   : > { %742 = vrot.lane.b32.xlu1 %v445_v30, %s1345_s22  ;;  %606 = vrot.lane.b32.xlu0 %v447_v39, %s1342_s19 }
 0x14d   : > { %788 = vrot.lane.b32.xlu1 %v445_v30, %s1346_s20  ;;  %698 = vrot.lane.b32.xlu0 %v447_v39, %s1344_s17 }
 0x151   : > { %516 = vrot.lane.b32.xlu1 %v1592_v38, %s1339_s13  ;;  %744 = vrot.lane.b32.xlu0 %v447_v39, %s1345_s22 }
 0x155   : > { %608 = vrot.lane.b32.xlu1 %v1592_v38, %s1342_s19  ;;  %790 = vrot.lane.b32.xlu0 %v447_v39, %s1346_s20 }
 0x159   : > { %700 = vrot.lane.b32.xlu1 %v1592_v38, %s1344_s17  ;;  %518 = vrot.lane.b32.xlu0 %v448_v40, %s1339_s13 }
 0x15d   : > { %746 = vrot.lane.b32.xlu1 %v1592_v38, %s1345_s22  ;;  %610 = vrot.lane.b32.xlu0 %v448_v40, %s1342_s19 }
 0x161   : > { %467 = vrot.lane.b32.xlu1 %v447_v39, %s1340_s21  ;;  %702 = vrot.lane.b32.xlu0 %v448_v40, %s1344_s17  ;;  %s1650_s17 = scalar_lea.vmem [#allocation7], %s1064_s16 }
 0x162   : > { %951 = vst [vmem:[%s1650_s17] sm:$0xff] %v339_v53  ;;  %952 = vst [vmem:[%s1650_s17 + $0x8] sm:$0xff] %v340_v54  ;;  %s973_s26 = sshll.u32 %s1650_s17, 4  ;;  %s1947_s26 = int_to_ptr.vmem [resolvable:$true] %s973_s26 }
 0x163   : > { %953 = vst [vmem:[%s1650_s17 + $0x20] sm:$0xff] %v341_v55  ;;  %954 = vst [vmem:[%s1650_s17 + $0x28] sm:$0xff] %v342_v56  ;;  %s1251_s19 = scalar_lea.vmem %s1947_s26, 1024 }
 0x164   : > { %p1252_p4 = scmp.ne.s32.totalorder %s1947_s26, %s1251_s19 }
 0x165   : > { %560 = vrot.lane.b32.xlu1 %v447_v39, %s1341_s18  ;;  %748 = vrot.lane.b32.xlu0 %v448_v40, %s1345_s22 }
 0x166   : > { %p1253_p6 = pnand %p1252_p4, %p1486_p12 }
 0x168   : > { %p1254_p8 = pneg %p1253_p6 }
 0x169   : > { %652 = vrot.lane.b32.xlu1 %v447_v39, %s1343_s14  ;;  %794 = vrot.lane.b32.xlu0 %v448_v40, %s1346_s20 }
 0x16d   : > { %471 = vrot.lane.b32.xlu1 %v448_v40, %s1340_s21  ;;  %843 = vperm.xlu0 %1192, %v835_v43   ;;  %v1734_v43 = vrot.slane %v1069_v32, %v1685_v16  ;;  %s1953_s21 = scalar_lea.hbm %s2007_s8, %s1084_s25 }
 0x171   : > { %564 = vrot.lane.b32.xlu1 %v448_v40, %s1341_s18  ;;  %s1347_s18 = smov [#allocation7]  }
 0x175   : > { %656 = vrot.lane.b32.xlu1 %v448_v40, %s1343_s14  ;;  %v1731_v40 = vrot.slane %v1069_v32, %v1683_v15  ;;  %s1255_s14 = sshll.u32 %s1347_s18, 4  ;;  %s1256_s14 = int_to_ptr.vmem [resolvable:$false] %s1255_s14 }
 0x176   : > { %s1257_s16 = scalar_lea.vmem %s1256_s14, 2048  ;;  %p1258_p10 = scmp.lt.s32.totalorder %s1947_s26, %s1256_s14 }
 0x177   : > { %p1259_p13 = scmp.lt.s32.totalorder %s1257_s16, %s1251_s19 }
 0x179   : > { %792 = vrot.lane.b32.xlu1 %v1592_v38, %s1346_s20  ;;  %p1260_p3 = por %p1259_p13, %p1258_p10 }
 0x17b   : > { %p1261_p7 = pnand %p1260_p3, %p1254_p8 }
 0x17d   : > { %838 = vperm.xlu1 %1191, %v834_v45  }
 0x181   : > { %856 = vperm.xlu1 %1191, %v852_v47  }
 0x185   : > { %861 = vperm.xlu1 %1191, %v853_v48   ;;  %v1071_v48 = vld [vmem:[%s2000_s1 + $0x3] ss:$8 sm:$0x3] }
 0x1a7   : > { %v513_v2 = vpop.permute.xlu1 %512  ;;  %v466_v3 = vpop.permute.xlu0 %465 }
 0x1ab   : > { %v559_v4 = vpop.permute.xlu1 %558  ;;  %v470_v5 = vpop.permute.xlu0 %469 }
 0x1ac   : > { %v476_v20 = vsel %vm475_vm1, %v466_v3, %v470_v5  ;;  %v478_v21 = vsel %vm475_vm1, %v470_v5, %v466_v3  ;;  %v462_v3 = vmul.f32 %v1585_v29, %v1592_v38 }
 0x1ad   : > { %v488_v25 = vmul.f32 %v1581_v23, %v478_v21  ;;  %v489_v27 = vmul.f32 %v1581_v23, %v476_v20  ;;  %v1723_v23 = vrot.slane %v1070_v28, %v1683_v15 }
 0x1af   : > { %v605_v6 = vpop.permute.xlu1 %604  ;;  %v563_v7 = vpop.permute.xlu0 %562  ;;  %v504_v37 = vmul.f32 %v1700_v22, %v488_v25  ;;  %v505_v39 = vmul.f32 %v1703_v24, %v489_v27 }
 0x1b0   : > { %v567_v34 = vsel %vm566_vm2, %v559_v4, %v563_v7  ;;  %v569_v35 = vsel %vm566_vm2, %v563_v7, %v559_v4  ;;  %v1753_v7 = vrot.slane %v1071_v48, %v1683_v15 }
 0x1b1   : > { %v579_v53 = vmul.f32 %v1628_v46, %v569_v35  ;;  %v580_v54 = vmul.f32 %v1628_v46, %v567_v34  ;;  %v1756_v46 = vrot.slane %v1071_v48, %v1685_v16  ;;  %v508_v8 = vadd.f32 %v504_v37, %v1588_v33 }
 0x1b2   : > { %v509_v12 = vadd.f32 %v505_v39, %v462_v3 }
 0x1b3   : > { %v1672_v9 = vpop.permute.xlu1 %650  ;;  %v1674_v10 = vpop.permute.xlu0 %654  ;;  %v596_v38 = vmul.f32 %v1723_v23, %v579_v53 }
 0x1b7   : > { %v1678_v13 = vpop.permute.xlu1 %696  ;;  %v1680_v14 = vpop.permute.xlu0 %514 }
 0x1bb   : > { %v1687_v17 = vpop.permute.xlu1 %742  ;;  %v1689_v18 = vpop.permute.xlu0 %606 }
 0x1bf   : > { %v1710_v30 = vpop.permute.xlu1 %788  ;;  %v1712_v31 = vpop.permute.xlu0 %698 }
 0x1c3   : > { %v517_v45 = vpop.permute.xlu1 %516  ;;  %v1736_v47 = vpop.permute.xlu0 %744 }
 0x1c4   : > { %v521_v55 = vsel %vm520_vm3, %v513_v2, %v517_v45  ;;  %v523_v56 = vsel %vm520_vm3, %v517_v45, %v513_v2 }
 0x1c5   : > { %v533_v4 = vmul.f32 %v1622_v44, %v523_v56  ;;  %v534_v5 = vmul.f32 %v1622_v44, %v521_v55  ;;  %v597_v44 = vmul.f32 %v1726_v36, %v580_v54 }
 0x1c7   : > { %v550_v2 = vmul.f32 %v1731_v40, %v533_v4  ;;  %v551_v19 = vmul.f32 %v1734_v43, %v534_v5  ;;  %v609_v29 = vpop.permute.xlu1 %608  ;;  %v1769_v32 = vpop.permute.xlu0 %790  ;;  %v1073_v4 = vld [vmem:[%s2000_s1 + $0x6] ss:$8 sm:$0x3]  ;;  %v1074_v5 = vld [vmem:[%s2000_s1 + $0x7] ss:$8 sm:$0x3] }
 0x1c8   : > { %v613_v20 = vsel %vm612_vm4, %v605_v6, %v609_v29  ;;  %v615_v21 = vsel %vm612_vm4, %v609_v29, %v605_v6 }
 0x1c9   : > { %v554_v25 = vadd.f32 %v550_v2, %v508_v8  ;;  %v555_v27 = vadd.f32 %v551_v19, %v509_v12  ;;  %v625_v33 = vmul.f32 %v1642_v52, %v615_v21  ;;  %v626_v28 = vmul.f32 %v1642_v52, %v613_v20  ;;  %v1072_v52 = vld [vmem:[%s2000_s1 + $0x5] ss:$8 sm:$0x3]  ;;  %v1075_v21 = vld [vmem:[%s2000_s1 + $0x10] ss:$8 sm:$0x3] }
 0x1ca   : > { %v1790_v2 = vrot.slane %v1072_v52, %v1683_v15  ;;  %v1793_v19 = vrot.slane %v1072_v52, %v1685_v16  ;;  %v1806_v20 = vrot.slane %v1073_v4, %v1685_v16 }
 0x1cb   : > { %v600_v34 = vadd.f32 %v596_v38, %v554_v25  ;;  %v601_v35 = vadd.f32 %v597_v44, %v555_v27  ;;  %v642_v37 = vmul.f32 %v1753_v7, %v625_v33  ;;  %v643_v39 = vmul.f32 %v1756_v46, %v626_v28  ;;  %v701_v45 = vpop.permute.xlu1 %700  ;;  %v519_v6 = vpop.permute.xlu0 %518 }
 0x1cc   : > { %v522_v29 = vsel %vm520_vm3, %v1680_v14, %v519_v6  ;;  %v524_v38 = vsel %vm520_vm3, %v519_v6, %v1680_v14  ;;  %v1803_v44 = vrot.slane %v1073_v4, %v1683_v15  ;;  %v659_v25 = vsel %vm658_vm5, %v1672_v9, %v1674_v10 }
 0x1cd   : > { %v1773_v48 = vadd.f32 %v642_v37, %v600_v34  ;;  %v1775_v53 = vadd.f32 %v643_v39, %v601_v35  ;;  %v661_v14 = vsel %vm658_vm5, %v1674_v10, %v1672_v9  ;;  %v1821_v27 = vrot.slane %v1074_v5, %v1683_v15 }
 0x1ce   : > { %v1824_v33 = vrot.slane %v1074_v5, %v1685_v16  ;;  %v535_v28 = vmul.f32 %v1638_v50, %v524_v38  ;;  %v536_v34 = vmul.f32 %v1638_v50, %v522_v29  ;;  %v1840_v6 = vrot.slane %v1075_v21, %v1683_v15 }
 0x1cf   : > { %v1777_v54 = vpop.permute.xlu1 %746  ;;  %v611_v56 = vpop.permute.xlu0 %610  ;;  %v1843_v50 = vrot.slane %v1075_v21, %v1685_v16  ;;  %v671_v52 = vmul.f32 %v1656_v57, %v659_v25  ;;  %v672_v4 = vmul.f32 %v1656_v57, %v661_v14  ;;  %v705_v29 = vsel %vm704_vm6, %v1678_v13, %v701_v45 }
 0x1d0   : > { %v614_v35 = vsel %vm612_vm4, %v1689_v18, %v611_v56  ;;  %v616_v37 = vsel %vm612_vm4, %v611_v56, %v1689_v18  ;;  %v707_v15 = vsel %vm704_vm6, %v701_v45, %v1678_v13  ;;  %v552_v38 = vmul.f32 %v1731_v40, %v535_v28 }
 0x1d1   : > { %v627_v16 = vmul.f32 %v1640_v51, %v616_v37  ;;  %v553_v57 = vmul.f32 %v1734_v43, %v536_v34 }
 0x1d3   : > { %v468_v55 = vpop.permute.xlu1 %467  ;;  %v703_v8 = vpop.permute.xlu0 %702  ;;  %v644_v28 = vmul.f32 %v1753_v7, %v627_v16 }
 0x1d4   : > { %v706_v14 = vsel %vm704_vm6, %v1712_v31, %v703_v8  ;;  %v708_v13 = vsel %vm704_vm6, %v703_v8, %v1712_v31 }
 0x1d5   : > { %v719_v7 = vmul.f32 %v1660_v59, %v706_v14 }
 0x1d7   : > { %v561_v3 = vpop.permute.xlu1 %560  ;;  %v749_v18 = vpop.permute.xlu0 %748 }
 0x1d8   : > { %v752_v31 = vsel %vm750_vm7, %v1736_v47, %v749_v18 }
 0x1db   : > { %v653_v12 = vpop.permute.xlu1 %652  ;;  %v795_v8 = vpop.permute.xlu0 %794 }
 0x1df   : > { %v472_v9 = vpop.permute.xlu1 %471 }
 0x1e0   : > { %v477_v10 = vsel %vm475_vm1, %v468_v55, %v472_v9  ;;  %v479_v39 = vsel %vm475_vm1, %v472_v9, %v468_v55  ;;  %v628_v55 = vmul.f32 %v1640_v51, %v614_v35 }
 0x1e1   : > { %v490_v56 = vmul.f32 %v1583_v26, %v479_v39  ;;  %v491_v5 = vmul.f32 %v1583_v26, %v477_v10 }
 0x1e2   : > { %v645_v34 = vmul.f32 %v1756_v46, %v628_v55  ;;  %v720_v46 = vmul.f32 %v1660_v59, %v708_v13  ;;  %v798_v59 = vsel %vm796_vm8, %v1769_v32, %v795_v8 }
 0x1e3   : > { %v506_v21 = vmul.f32 %v1700_v22, %v490_v56  ;;  %v507_v26 = vmul.f32 %v1703_v24, %v491_v5  ;;  %v565_v25 = vpop.permute.xlu1 %564  ;;  %v800_v5 = vsel %vm796_vm8, %v795_v8, %v1769_v32 }
 0x1e4   : > { %v568_v51 = vsel %vm566_vm2, %v561_v3, %v565_v25  ;;  %v570_v40 = vsel %vm566_vm2, %v565_v25, %v561_v3  ;;  %v754_v3 = vsel %vm750_vm7, %v749_v18, %v1736_v47  ;;  %v737_v32 = vmul.f32 %v1806_v20, %v720_v46 }
 0x1e5   : > { %v510_v43 = vadd.f32 %v506_v21, %v1594_v41  ;;  %v511_v22 = vadd.f32 %v507_v26, %v1599_v42  ;;  %v581_v24 = vmul.f32 %v1636_v49, %v570_v40  ;;  %v582_v45 = vmul.f32 %v1636_v49, %v568_v51 }
 0x1e6   : > { %v811_v21 = vmul.f32 %v1668_v63, %v798_v59  ;;  %v812_v26 = vmul.f32 %v1668_v63, %v800_v5  ;;  %v688_v51 = vmul.f32 %v1790_v2, %v671_v52  ;;  %v689_v40 = vmul.f32 %v1793_v19, %v672_v4 }
 0x1e7   : > { %v556_v41 = vadd.f32 %v552_v38, %v510_v43  ;;  %v557_v35 = vadd.f32 %v553_v57, %v511_v22  ;;  %v598_v42 = vmul.f32 %v1723_v23, %v581_v24  ;;  %v599_v37 = vmul.f32 %v1726_v36, %v582_v45  ;;  %v657_v49 = vpop.permute.xlu1 %656 }
 0x1e8   : > { %v660_v9 = vsel %vm658_vm5, %v653_v12, %v657_v49  ;;  %v662_v10 = vsel %vm658_vm5, %v657_v49, %v653_v12  ;;  %v765_v23 = vmul.f32 %v1666_v62, %v752_v31  ;;  %v766_v36 = vmul.f32 %v1666_v62, %v754_v3 }
 0x1e9   : > { %v602_v39 = vadd.f32 %v598_v42, %v556_v41  ;;  %v603_v47 = vadd.f32 %v599_v37, %v557_v35  ;;  %v673_v18 = vmul.f32 %v1658_v58, %v660_v9  ;;  %v674_v56 = vmul.f32 %v1658_v58, %v662_v10 }
 0x1ea   : > { %v751_v58 = vsel %vm750_vm7, %v1687_v17, %v1777_v54  ;;  %v753_v62 = vsel %vm750_vm7, %v1777_v54, %v1687_v17  ;;  %v736_v57 = vmul.f32 %v1803_v44, %v719_v7  ;;  %v717_v43 = vmul.f32 %v1662_v60, %v705_v29 }
 0x1eb   : > { %v648_v16 = vadd.f32 %v644_v28, %v602_v39  ;;  %v649_v12 = vadd.f32 %v645_v34, %v603_v47  ;;  %v690_v55 = vmul.f32 %v1790_v2, %v673_v18  ;;  %v691_v38 = vmul.f32 %v1793_v19, %v674_v56  ;;  %v793_v13 = vpop.permute.xlu1 %792 }
 0x1ec   : > { %v718_v22 = vmul.f32 %v1662_v60, %v707_v15  ;;  %v782_v17 = vmul.f32 %v1821_v27, %v765_v23  ;;  %v783_v54 = vmul.f32 %v1824_v33, %v766_v36  ;;  %v763_v28 = vmul.f32 %v1664_v61, %v751_v58  ;;  %v844_v7 = vpop.permute.xlu0 %843 }
 0x1ed   : > { %v694_v25 = vadd.f32 %v690_v55, %v648_v16  ;;  %v695_v14 = vadd.f32 %v691_v38, %v649_v12  ;;  %v764_v63 = vmul.f32 %v1664_v61, %v753_v62  ;;  %v797_v2 = vsel %vm796_vm8, %v1710_v30, %v793_v13 }
 0x1ee   : > { %v799_v19 = vsel %vm796_vm8, %v793_v13, %v1710_v30  ;;  %v828_v4 = vmul.f32 %v1840_v6, %v811_v21  ;;  %v829_v29 = vmul.f32 %v1843_v50, %v812_v26  ;;  %v692_v15 = vadd.f32 %v688_v51, %v1773_v48 }
 0x1ef   : > { %v740_v24 = vadd.f32 %v736_v57, %v694_v25  ;;  %v741_v45 = vadd.f32 %v737_v32, %v695_v14  ;;  %v693_v34 = vadd.f32 %v689_v40, %v1775_v53  ;;  %v734_v61 = vmul.f32 %v1803_v44, %v717_v43 }
 0x1f0   : > { %v735_v31 = vmul.f32 %v1806_v20, %v718_v22  ;;  %v809_v3 = vmul.f32 %v1670_v1, %v797_v2  ;;  %v810_v8 = vmul.f32 %v1670_v1, %v799_v19  ;;  %v780_v41 = vmul.f32 %v1821_v27, %v763_v28 }
 0x1f1   : > { %v786_v52 = vadd.f32 %v782_v17, %v740_v24  ;;  %v787_v60 = vadd.f32 %v783_v54, %v741_v45  ;;  %v781_v35 = vmul.f32 %v1824_v33, %v764_v63  ;;  %v738_v42 = vadd.f32 %v734_v61, %v692_v15  ;;  %v850_v33 = vld [vmem:[#allocation5] sm:$0xff] }
 0x1f2   : > { %v739_v37 = vadd.f32 %v735_v31, %v693_v34  ;;  %v826_v48 = vmul.f32 %v1840_v6, %v809_v3  ;;  %v827_v53 = vmul.f32 %v1843_v50, %v810_v8  ;;  %v851_v6 = vld [vmem:[#allocation5 + $0x8] sm:$0xff] }
 0x1f3   : > { %v832_v11 = vadd.f32 %v828_v4, %v786_v52  ;;  %v833_v30 = vadd.f32 %v829_v29, %v787_v60  ;;  %v784_v49 = vadd.f32 %v780_v41, %v738_v42 }
 0x1f4   : > { %v785_v44 = vadd.f32 %v781_v35, %v739_v37 }
 0x1f5   : > { %v830_v20 = vadd.f32 %v826_v48, %v784_v49  ;;  %v848_v10 = vadd.f32 %v844_v7, %v832_v11  ;;  %v849_v1 = vadd.f32 %v844_v7, %v833_v30 }
 0x1f6   : > { %v831_v46 = vadd.f32 %v827_v53, %v785_v44 }
 0x1fc   : > { %v839_v9 = vpop.permute.xlu1 %838 }
 0x1fd   : > { %v846_v39 = vadd.f32 %v839_v9, %v830_v20  ;;  %v847_v47 = vadd.f32 %v839_v9, %v831_v46 }
 0x1ff   : > { %v1089_v27 = vpack.c.bf16 %v849_v1, %v847_v47  ;;  %v1091_v18 = vpack.c.bf16 %v848_v10, %v846_v39 }
 0x200   : > { %v857_v50 = vpop.permute.xlu1 %856 }
 0x201   : > { %1090 = vmatprep.subr.bf16.mxu1 %v1089_v27 }
 0x202   : > { %1092 = vmatpush1.bf16.msra.mxu1 %v1091_v18 }
 0x204   : > { %v862_v16 = vpop.permute.xlu1 %861 }
 0x205   : > { %1076 = vmatmul.mubr.msk.f32.vlgmr.msra.gmra.mrb[0].mxu1 %vm361_vm0, %v850_v33 }
 0x206   : > { %940 = vmatprep.mubr.f32.mxu1 %v1329_v0 }
 0x209   : > { %1077 = vmatmul.mubr.msk.f32.gmra.mrb[2].mxu1 %vm361_vm0, %v851_v6 }
 0x2d8   : > { %v936_v56 = vpop.f32.mrb[0].mxu1 }
 0x2d9   : > { %v937_v23 = vadd.f32 %v936_v56, %v857_v50  ;;  %v938_v36 = vpop.f32.mrb[1].mxu1 }
 0x2da   : > { %v939_v59 = vadd.f32 %v938_v36, %v857_v50 }
 0x2db   : > { %v947_v5 = vmax.f32 %v937_v23, 0.0 }
 0x2dc   : > { %v948_v12 = vmax.f32 %v939_v59, 0.0  ;;  %v942_v55 = vpop.f32.mrb[2].mxu1 }
 0x2dd   : > { %955 = vst [vmem:[%s1650_s17 + $0x10] sm:$0xff] %v947_v5  ;;  %v943_v0 = vadd.f32 %v942_v55, %v862_v16  ;;  %v944_v38 = vpop.f32.mrb[3].mxu1 }
 0x2de   : > { %956 = vst [vmem:[%s1650_s17 + $0x18] sm:$0xff] %v948_v12  ;;  %v945_v58 = vadd.f32 %v944_v38, %v862_v16 }
 0x2df   : > { %v949_v62 = vmax.f32 %v943_v0, 0.0 }
 0x2e0   : > { %v950_v57 = vmax.f32 %v945_v58, 0.0 }
 0x2e1   : > { %957 = vst [vmem:[%s1650_s17 + $0x30] sm:$0xff] %v949_v62 }
 0x2e2   : > { %958 = vst [vmem:[%s1650_s17 + $0x38] sm:$0xff] %v950_v57 }
 0x2e3   : > { %1264 = shalt.err (!%p1261_p7)
}
 0x2e4   : > { %s1265_s17 = scalar_lea.hbm %s1953_s21, 1024  ;;  %s1269_s20 = scalar_lea.hbm %s2007_s8, 2048 }
 0x2e5   : > { %p1266_p9 = scmp.ne.s32.totalorder %s1953_s21, %s1265_s17  ;;  %p1270_p5 = scmp.lt.u32.totalorder %s1953_s21, %s2007_s8 }
 0x2e6   : > { %p1271_p11 = scmp.lt.u32.totalorder %s1269_s20, %s1265_s17  ;;  %p1273_p4 = scmp.lt.u32.totalorder %s1265_s17, %s1953_s21 }
 0x2e7   : > { %p1267_p2 = pnand %p1266_p9, %p1486_p12 }
 0x2e8   : > { %p1272_p1 = por %p1271_p11, %p1270_p5 }
 0x2e9   : > { %p1268_p0 = pneg %p1267_p2 }
 0x2ea   : > { %p1274_p6 = por %p1273_p4, %p1272_p1 }
 0x2ec   : > { %p1275_p8 = pnand %p1274_p6, %p1268_p0 }
 0x2ee   : > { %1278 = shalt.err (!%p1275_p8)
}
 0x2ef   : > { %s1348_s13 = smov 512   ;;  %s1349_s19 = smov 32  }
 0x2f0   : > { %1099 = dma.vmem_to_hbm [thread:$0]  (%p1486_p12), %s1947_s26, 1024, %s1953_s21, %s960_s9, %s1348_s13, %s1348_s13, %s1349_s19  }
 0x2f1 PF: > { %s988_s18 = sand.u32 1, %s1309_s27   ;;  %p2025_p10 = scmp.ne.s32.totalorder %s2014_s12, 0 }
 0x2f2   : > { %p2026_p13 = scmp.ge.s32.totalorder %s1321_s30, 2  ;;  %s989_s14 = scalar_lea.sflag [#allocation4], %s988_s18 }
 0x2f4   : > { %p1110_p3 = pnand %p2026_p13, %p2025_p10 }
 0x2f6   : > { %1304 = dma.done.wait (!%p1110_p3), %s989_s14, 1024  }
 0x2f7   : > { %1306 = vsyncadd (!%p1110_p3), %s989_s14, 4294966272  ;;  %s2027_s30 = sld [smem:[#allocation11_spill]]  ;;  %s2028_s27 = smov %s1313_s28 }
 0x2f8   : > { %s2029_s28 = smov %s1317_s29  ;;  %s2030_s29 = smov %s1482_s23 }
 0x2fd   : > { %p22_p7 = scmp.ge.s32.totalorder %s2027_s30, 4  }
 0x2ff   :  { %24 = sbr.rel (!%p22_p7) target bundleno = 6 (0x6), region = 108 }
 0x306   :  { %994 = vsyncpa [#allocation3], 1 }
 0x307   :  { %996 = vsyncpa [#allocation3 + $0x1], 1 }
 0x308   :  { %997 = vsyncpa [#allocation6], 1 }
 0x309   :  { %998 = vsyncpa [#allocation4], 1 }
 0x30a   :  { %1000 = vsyncpa [#allocation4 + $0x1], 1 }

</bundles_post_ra>
